<compile_context>
chip_gen: v5e
topology: v5e:2x2
jax: 0.10.0
libtpu: 0.0.40
codegen_flags: <defaults>
</compile_context>

<pallas_src>
import numpy as np
import jax
import jax.numpy as jnp
from jax.experimental import pallas as pl
from jax.experimental.pallas import tpu as pltpu

# scaled-down STFT hyperparameters (module defaults are 800 / 200 / 800, 'hann')
FILTER_LENGTH = 64
HOP_LENGTH = 16
WIN_LENGTH = 64
CUTOFF = FILTER_LENGTH // 2 + 1          # 33
RATIO = FILTER_LENGTH // HOP_LENGTH      # 4 hop-blocks per frame
PAD_2C = 128                             # 2*CUTOFF = 66 padded up to a full lane width


# ----------------------------- parameter construction (deterministic) -----------------------------
def _hann_periodic(n):
    return (0.5 - 0.5 * np.cos(2.0 * np.pi * np.arange(n) / n)).astype(np.float32)


def make_stft_bases_padded():
    scale = FILTER_LENGTH / HOP_LENGTH
    fb = np.fft.fft(np.eye(FILTER_LENGTH))
    fb = np.vstack([np.real(fb[:CUTOFF, :]), np.imag(fb[:CUTOFF, :])]).astype(np.float32)   # (2C, L)
    win = _hann_periodic(WIN_LENGTH)      # win_length == filter_length, so pad_center is a no-op
    forward_basis = fb * win[None, :]                                                        # (2C, L)
    inverse_basis = np.linalg.pinv(scale * fb).T.astype(np.float32) * win[None, :]           # (2C, L)
    # zero-pad the 2C = 66 basis columns/rows to 128 so the in-kernel transform is lane-dense
    fwd_t_pad = np.zeros((FILTER_LENGTH, PAD_2C), np.float32)
    fwd_t_pad[:, :2 * CUTOFF] = forward_basis.T
    inv_pad = np.zeros((PAD_2C, FILTER_LENGTH), np.float32)
    inv_pad[:2 * CUTOFF, :] = inverse_basis
    return fwd_t_pad, inv_pad


def window_sumsquare_np(n_frames):
    n = FILTER_LENGTH + HOP_LENGTH * (n_frames - 1)
    x = np.zeros(n, dtype=np.float32)
    win_sq = _hann_periodic(WIN_LENGTH) ** 2          # normalize(norm=None) is identity
    for i in range(n_frames):
        sample = i * HOP_LENGTH
        x[sample:min(n, sample + FILTER_LENGTH)] += win_sq[:max(0, min(FILTER_LENGTH, n - sample))]
    return x


def make_correction(n_frames):
    """Precomputed per-sample multiplier: (1/ws where ws > tiny else 1) * (L/hop)."""
    ws = window_sumsquare_np(n_frames)
    mask = ws > np.finfo(np.float32).tiny
    corr = np.where(mask, 1.0 / np.where(mask, ws, 1.0), 1.0) * (FILTER_LENGTH / HOP_LENGTH)
    nb = n_frames + RATIO - 1
    return corr.reshape(nb, HOP_LENGTH).astype(np.float32)


# ----------------------------------------- fused Pallas kernel -----------------------------------------
def _stft_fused_kernel(slab_ref, fwd_ref, inv_ref, corr_ref, ft_ref, recon_ref):
    n_frames = ft_ref.shape[1]
    hop = slab_ref.shape[2]
    nb = n_frames + RATIO - 1            # hop-blocks in the (uncropped) reconstructed signal

    # ---- analysis: frame i = padded[i*hop : i*hop + L].  conv1d(stride=hop) is expressed as a
    # sum of RATIO hop-wide MXU matmuls over shifted views of the hop-blocked audio, so the
    # (n_frames, L) frame matrix is never materialized (in HBM or VMEM).
    ft = jnp.zeros((n_frames, PAD_2C), jnp.float32)
    for j in range(RATIO):
        ft = ft + jnp.dot(slab_ref[0, j:j + n_frames, :],
                          fwd_ref[j * hop:(j + 1) * hop, :],
                          preferred_element_type=jnp.float32)
    ft_ref[0] = ft                       # (F, 128) = [real | imag | zero pad], lane-dense store

    # ---- synthesis + overlap-add: the recombined tensor [mag*cos(phase), mag*sin(phase)] is
    # identically ft, so feed it straight into the transposed-conv basis.  The conv_transpose1d
    # scatter becomes RATIO shifted accumulations, written as tiny 0/1 shift matmuls
    # (output block k receives frame k-j's j-th hop slice).
    row = jax.lax.broadcasted_iota(jnp.int32, (nb, n_frames), 0)
    col = jax.lax.broadcasted_iota(jnp.int32, (nb, n_frames), 1)
    ola = jnp.zeros((nb, hop), jnp.float32)
    for j in range(RATIO):
        contrib = jnp.dot(ft, inv_ref[:, j * hop:(j + 1) * hop],
                          preferred_element_type=jnp.float32)             # (F, hop)
        shift = (row - col == j).astype(jnp.float32)                      # (nb, F) 0/1 band
        ola = ola + jnp.dot(shift, contrib, preferred_element_type=jnp.float32)

    # ---- window-sumsquare correction folded into one precomputed reciprocal multiply.
    recon_ref[0] = ola * corr_ref[...]


# ------------------------------------------- forward pass ------------------------------------------
def stft_forward(x, fwd_t_pad, inv_pad):
    B, T = x.shape
    L, hop, half = FILTER_LENGTH, HOP_LENGTH, FILTER_LENGTH // 2
    assert T % hop == 0  # TODO(synk): arbitrary lengths need a small tail pad before the hop-blocked reshape
    n_frames = T // hop + 1
    nb = n_frames + RATIO - 1

    padded = jnp.pad(x, ((0, 0), (half, half)), mode='reflect')            # (B, T + L)
    slab = padded.reshape(B, nb, hop)                                      # hop-blocked view (free reshape)
    corr = jnp.asarray(make_correction(n_frames))                          # (nb, hop), static

    ft, recon_blocks = pl.pallas_call(
        _stft_fused_kernel,
        out_shape=(jax.ShapeDtypeStruct((B, n_frames, PAD_2C), jnp.float32),
                   jax.ShapeDtypeStruct((B, nb, hop), jnp.float32)),
        grid=(B,),
        in_specs=[pl.BlockSpec((1, nb, hop), lambda b: (b, 0, 0)),
                  pl.BlockSpec((L, PAD_2C), lambda b: (0, 0)),      # bases stay VMEM-resident
                  pl.BlockSpec((PAD_2C, L), lambda b: (0, 0)),
                  pl.BlockSpec((nb, hop), lambda b: (0, 0))],
        out_specs=(pl.BlockSpec((1, n_frames, PAD_2C), lambda b: (b, 0, 0)),
                   pl.BlockSpec((1, nb, hop), lambda b: (b, 0, 0))),
        compiler_params=pltpu.CompilerParams(dimension_semantics=("parallel",)),
    )(slab, fwd_t_pad, inv_pad, corr)

    # magnitude / phase: tiny elementwise glue on the lane-dense transform output.
    real = ft[:, :, :CUTOFF]
    imag = ft[:, :, CUTOFF:2 * CUTOFF]
    magnitude = jnp.sqrt(real * real + imag * imag).transpose(0, 2, 1)      # (B, C, F)
    # TODO(synk): arctan2 stays in XLA glue (Mosaic lowering not guaranteed); it is no longer on
    # the reconstruction path, only the returned phase.
    phase = jnp.arctan2(imag, real).transpose(0, 2, 1)                      # (B, C, F)

    reconstruction = recon_blocks.reshape(B, nb * hop)[:, half:half + T][:, None, :]  # (B, 1, T)
    return reconstruction, magnitude, phase


# ----------------------------------------------- main ----------------------------------------------
if __name__ == "__main__":
    key = jax.random.PRNGKey(0)
    B, T = 2, 256
    x = jax.random.normal(key, (B, T), dtype=jnp.float32)

    n_frames = T // HOP_LENGTH + 1
    fwd_np, inv_np = make_stft_bases_padded()
    fwd_t_pad = jnp.asarray(fwd_np)
    inv_pad = jnp.asarray(inv_np)

    fn = jax.jit(stft_forward)
    recon, mag, phase = fn(x, fwd_t_pad, inv_pad)
    recon, mag, phase = jax.block_until_ready((recon, mag, phase))

    assert recon.shape == (B, 1, T), recon.shape
    assert mag.shape == (B, CUTOFF, n_frames), mag.shape
    assert phase.shape == (B, CUTOFF, n_frames), phase.shape

    # numpy reference for the analysis path (framing + forward-basis matmul)
    x_np = np.asarray(x)
    padded_np = np.pad(x_np, ((0, 0), (FILTER_LENGTH // 2, FILTER_LENGTH // 2)), mode='reflect')
    frames_np = np.stack([padded_np[:, i * HOP_LENGTH: i * HOP_LENGTH + FILTER_LENGTH]
                          for i in range(n_frames)], axis=1)                          # (B, F, L)
    ft_np = frames_np @ fwd_np[:, :2 * CUTOFF]                                        # (B, F, 2C)
    mag_np = np.sqrt(ft_np[..., :CUTOFF] ** 2 + ft_np[..., CUTOFF:] ** 2).transpose(0, 2, 1)
    np.testing.assert_allclose(np.asarray(mag), mag_np, atol=5e-2, rtol=5e-3)

    # sanity: STFT -> iSTFT with window correction reconstructs the input
    np.testing.assert_allclose(np.asarray(recon)[:, 0, :], x_np, atol=5e-3, rtol=0)
    print("KERNEL_OK")
</pallas_src>

<mosaic_0001>
module attributes {stable_mosaic.version = 11 : i64} {
  func.func @_stft_fused_kernel(%arg0: i32, %arg1: memref<1x20x16xf32, #tpu.memory_space<vmem>>, %arg2: memref<64x128xf32, #tpu.memory_space<vmem>>, %arg3: memref<128x64xf32, #tpu.memory_space<vmem>>, %arg4: memref<20x16xf32, #tpu.memory_space<vmem>>, %arg5: memref<1x17x128xf32, #tpu.memory_space<vmem>>, %arg6: memref<1x20x16xf32, #tpu.memory_space<vmem>>) attributes {dimension_semantics = [#tpu.dimension_semantics<parallel>], iteration_bounds = array<i64: 2>, scalar_prefetch = 0 : i64, scratch_operands = 0 : i64, tpu.core_type = #tpu.core_type<tc>, window_params = [{transform_indices = @transform_0, window_bounds = array<i64: 1, 20, 16>}, {pipeline_mode = #tpu.pipeline_mode<synchronous>, transform_indices = @transform_1, window_bounds = array<i64: 64, 128>}, {pipeline_mode = #tpu.pipeline_mode<synchronous>, transform_indices = @transform_2, window_bounds = array<i64: 128, 64>}, {pipeline_mode = #tpu.pipeline_mode<synchronous>, transform_indices = @transform_3, window_bounds = array<i64: 20, 16>}, {transform_indices = @transform_4, window_bounds = array<i64: 1, 17, 128>}, {transform_indices = @transform_5, window_bounds = array<i64: 1, 20, 16>}]} {
    %cst = arith.constant 0.000000e+00 : f32
    %0 = vector.broadcast %cst : f32 to vector<17x128xf32>
    %c0 = arith.constant 0 : index
    %c0_0 = arith.constant 0 : index
    %c0_1 = arith.constant 0 : index
    %1 = vector.load %arg1[%c0, %c0_0, %c0_1] : memref<1x20x16xf32, #tpu.memory_space<vmem>>, vector<1x17x16xf32>
    %2 = vector.shape_cast %1 : vector<1x17x16xf32> to vector<17x16xf32>
    %c0_2 = arith.constant 0 : index
    %c0_3 = arith.constant 0 : index
    %3 = vector.load %arg2[%c0_2, %c0_3] : memref<64x128xf32, #tpu.memory_space<vmem>>, vector<16x128xf32>
    %cst_4 = arith.constant dense<0.000000e+00> : vector<17x128xf32>
    %4 = tpu.matmul %2, %3, %cst_4 {dimension_numbers = #tpu.dot_dimension_numbers<[1], [0], [0], [1], [0, 0, 1, 1], [], []>} : vector<17x16xf32>, vector<16x128xf32>, vector<17x128xf32> -> vector<17x128xf32>
    %5 = arith.addf %0, %4 : vector<17x128xf32>
    %c0_5 = arith.constant 0 : index
    %c1 = arith.constant 1 : index
    %c0_6 = arith.constant 0 : index
    %6 = vector.load %arg1[%c0_5, %c1, %c0_6] : memref<1x20x16xf32, #tpu.memory_space<vmem>>, vector<1x17x16xf32>
    %7 = vector.shape_cast %6 : vector<1x17x16xf32> to vector<17x16xf32>
    %c16 = arith.constant 16 : index
    %c0_7 = arith.constant 0 : index
    %8 = vector.load %arg2[%c16, %c0_7] : memref<64x128xf32, #tpu.memory_space<vmem>>, vector<16x128xf32>
    %cst_8 = arith.constant dense<0.000000e+00> : vector<17x128xf32>
    %9 = tpu.matmul %7, %8, %cst_8 {dimension_numbers = #tpu.dot_dimension_numbers<[1], [0], [0], [1], [0, 0, 1, 1], [], []>} : vector<17x16xf32>, vector<16x128xf32>, vector<17x128xf32> -> vector<17x128xf32>
    %10 = arith.addf %5, %9 : vector<17x128xf32>
    %c0_9 = arith.constant 0 : index
    %c2 = arith.constant 2 : index
    %c0_10 = arith.constant 0 : index
    %11 = vector.load %arg1[%c0_9, %c2, %c0_10] : memref<1x20x16xf32, #tpu.memory_space<vmem>>, vector<1x17x16xf32>
    %12 = vector.shape_cast %11 : vector<1x17x16xf32> to vector<17x16xf32>
    %c32 = arith.constant 32 : index
    %c0_11 = arith.constant 0 : index
    %13 = vector.load %arg2[%c32, %c0_11] : memref<64x128xf32, #tpu.memory_space<vmem>>, vector<16x128xf32>
    %cst_12 = arith.constant dense<0.000000e+00> : vector<17x128xf32>
    %14 = tpu.matmul %12, %13, %cst_12 {dimension_numbers = #tpu.dot_dimension_numbers<[1], [0], [0], [1], [0, 0, 1, 1], [], []>} : vector<17x16xf32>, vector<16x128xf32>, vector<17x128xf32> -> vector<17x128xf32>
    %15 = arith.addf %10, %14 : vector<17x128xf32>
    %c0_13 = arith.constant 0 : index
    %c3 = arith.constant 3 : index
    %c0_14 = arith.constant 0 : index
    %16 = vector.load %arg1[%c0_13, %c3, %c0_14] : memref<1x20x16xf32, #tpu.memory_space<vmem>>, vector<1x17x16xf32>
    %17 = vector.shape_cast %16 : vector<1x17x16xf32> to vector<17x16xf32>
    %c48 = arith.constant 48 : index
    %c0_15 = arith.constant 0 : index
    %18 = vector.load %arg2[%c48, %c0_15] : memref<64x128xf32, #tpu.memory_space<vmem>>, vector<16x128xf32>
    %cst_16 = arith.constant dense<0.000000e+00> : vector<17x128xf32>
    %19 = tpu.matmul %17, %18, %cst_16 {dimension_numbers = #tpu.dot_dimension_numbers<[1], [0], [0], [1], [0, 0, 1, 1], [], []>} : vector<17x16xf32>, vector<16x128xf32>, vector<17x128xf32> -> vector<17x128xf32>
    %20 = arith.addf %15, %19 : vector<17x128xf32>
    %c0_17 = arith.constant 0 : index
    %c0_18 = arith.constant 0 : index
    %c0_19 = arith.constant 0 : index
    %21 = vector.load %arg5[%c0_17, %c0_18, %c0_19] : memref<1x17x128xf32, #tpu.memory_space<vmem>>, vector<1x17x128xf32>
    %22 = vector.shape_cast %21 : vector<1x17x128xf32> to vector<17x128xf32>
    %23 = vector.shape_cast %20 : vector<17x128xf32> to vector<1x17x128xf32>
    tpu.vector_store %arg5[%c0_17, %c0_18, %c0_19], %23 {strides = array<i32>} : memref<1x17x128xf32, #tpu.memory_space<vmem>>, vector<1x17x128xf32>,
    %24 = tpu.iota {dimensions = array<i32: 0>} : vector<20x17xi32>
    %25 = tpu.iota {dimensions = array<i32: 1>} : vector<20x17xi32>
    %cst_20 = arith.constant 0.000000e+00 : f32
    %26 = vector.broadcast %cst_20 : f32 to vector<20x16xf32>
    %c0_21 = arith.constant 0 : index
    %c0_22 = arith.constant 0 : index
    %27 = vector.load %arg3[%c0_21, %c0_22] : memref<128x64xf32, #tpu.memory_space<vmem>>, vector<128x16xf32>
    %cst_23 = arith.constant dense<0.000000e+00> : vector<17x16xf32>
    %28 = tpu.matmul %20, %27, %cst_23 {dimension_numbers = #tpu.dot_dimension_numbers<[1], [0], [0], [1], [0, 0, 1, 1], [], []>} : vector<17x128xf32>, vector<128x16xf32>, vector<17x16xf32> -> vector<17x16xf32>
    %29 = arith.subi %24, %25 : vector<20x17xi32>
    %c0_i32 = arith.constant 0 : i32
    %30 = vector.broadcast %c0_i32 : i32 to vector<20x17xi32>
    %31 = arith.cmpi eq, %29, %30 : vector<20x17xi32>
    %32 = arith.extui %31 : vector<20x17xi1> to vector<20x17xi32>
    %33 = arith.sitofp %32 : vector<20x17xi32> to vector<20x17xf32>
    %cst_24 = arith.constant dense<0.000000e+00> : vector<20x16xf32>
    %34 = tpu.matmul %33, %28, %cst_24 {dimension_numbers = #tpu.dot_dimension_numbers<[1], [0], [0], [1], [0, 0, 1, 1], [], []>} : vector<20x17xf32>, vector<17x16xf32>, vector<20x16xf32> -> vector<20x16xf32>
    %35 = arith.addf %26, %34 : vector<20x16xf32>
    %c0_25 = arith.constant 0 : index
    %c16_26 = arith.constant 16 : index
    %36 = vector.load %arg3[%c0_25, %c16_26] : memref<128x64xf32, #tpu.memory_space<vmem>>, vector<128x16xf32>
    %cst_27 = arith.constant dense<0.000000e+00> : vector<17x16xf32>
    %37 = tpu.matmul %20, %36, %cst_27 {dimension_numbers = #tpu.dot_dimension_numbers<[1], [0], [0], [1], [0, 0, 1, 1], [], []>} : vector<17x128xf32>, vector<128x16xf32>, vector<17x16xf32> -> vector<17x16xf32>
    %38 = arith.subi %24, %25 : vector<20x17xi32>
    %c1_i32 = arith.constant 1 : i32
    %39 = vector.broadcast %c1_i32 : i32 to vector<20x17xi32>
    %40 = arith.cmpi eq, %38, %39 : vector<20x17xi32>
    %41 = arith.extui %40 : vector<20x17xi1> to vector<20x17xi32>
    %42 = arith.sitofp %41 : vector<20x17xi32> to vector<20x17xf32>
    %cst_28 = arith.constant dense<0.000000e+00> : vector<20x16xf32>
    %43 = tpu.matmul %42, %37, %cst_28 {dimension_numbers = #tpu.dot_dimension_numbers<[1], [0], [0], [1], [0, 0, 1, 1], [], []>} : vector<20x17xf32>, vector<17x16xf32>, vector<20x16xf32> -> vector<20x16xf32>
    %44 = arith.addf %35, %43 : vector<20x16xf32>
    %c0_29 = arith.constant 0 : index
    %c32_30 = arith.constant 32 : index
    %45 = vector.load %arg3[%c0_29, %c32_30] : memref<128x64xf32, #tpu.memory_space<vmem>>, vector<128x16xf32>
    %cst_31 = arith.constant dense<0.000000e+00> : vector<17x16xf32>
    %46 = tpu.matmul %20, %45, %cst_31 {dimension_numbers = #tpu.dot_dimension_numbers<[1], [0], [0], [1], [0, 0, 1, 1], [], []>} : vector<17x128xf32>, vector<128x16xf32>, vector<17x16xf32> -> vector<17x16xf32>
    %47 = arith.subi %24, %25 : vector<20x17xi32>
    %c2_i32 = arith.constant 2 : i32
    %48 = vector.broadcast %c2_i32 : i32 to vector<20x17xi32>
    %49 = arith.cmpi eq, %47, %48 : vector<20x17xi32>
    %50 = arith.extui %49 : vector<20x17xi1> to vector<20x17xi32>
    %51 = arith.sitofp %50 : vector<20x17xi32> to vector<20x17xf32>
    %cst_32 = arith.constant dense<0.000000e+00> : vector<20x16xf32>
    %52 = tpu.matmul %51, %46, %cst_32 {dimension_numbers = #tpu.dot_dimension_numbers<[1], [0], [0], [1], [0, 0, 1, 1], [], []>} : vector<20x17xf32>, vector<17x16xf32>, vector<20x16xf32> -> vector<20x16xf32>
    %53 = arith.addf %44, %52 : vector<20x16xf32>
    %c0_33 = arith.constant 0 : index
    %c48_34 = arith.constant 48 : index
    %54 = vector.load %arg3[%c0_33, %c48_34] : memref<128x64xf32, #tpu.memory_space<vmem>>, vector<128x16xf32>
    %cst_35 = arith.constant dense<0.000000e+00> : vector<17x16xf32>
    %55 = tpu.matmul %20, %54, %cst_35 {dimension_numbers = #tpu.dot_dimension_numbers<[1], [0], [0], [1], [0, 0, 1, 1], [], []>} : vector<17x128xf32>, vector<128x16xf32>, vector<17x16xf32> -> vector<17x16xf32>
    %56 = arith.subi %24, %25 : vector<20x17xi32>
    %c3_i32 = arith.constant 3 : i32
    %57 = vector.broadcast %c3_i32 : i32 to vector<20x17xi32>
    %58 = arith.cmpi eq, %56, %57 : vector<20x17xi32>
    %59 = arith.extui %58 : vector<20x17xi1> to vector<20x17xi32>
    %60 = arith.sitofp %59 : vector<20x17xi32> to vector<20x17xf32>
    %cst_36 = arith.constant dense<0.000000e+00> : vector<20x16xf32>
    %61 = tpu.matmul %60, %55, %cst_36 {dimension_numbers = #tpu.dot_dimension_numbers<[1], [0], [0], [1], [0, 0, 1, 1], [], []>} : vector<20x17xf32>, vector<17x16xf32>, vector<20x16xf32> -> vector<20x16xf32>
    %62 = arith.addf %53, %61 : vector<20x16xf32>
    %c0_37 = arith.constant 0 : index
    %c0_38 = arith.constant 0 : index
    %63 = vector.load %arg4[%c0_37, %c0_38] : memref<20x16xf32, #tpu.memory_space<vmem>>, vector<20x16xf32>
    %64 = arith.mulf %62, %63 : vector<20x16xf32>
    %c0_39 = arith.constant 0 : index
    %c0_40 = arith.constant 0 : index
    %c0_41 = arith.constant 0 : index
    %65 = vector.load %arg6[%c0_39, %c0_40, %c0_41] : memref<1x20x16xf32, #tpu.memory_space<vmem>>, vector<1x20x16xf32>
    %66 = vector.shape_cast %65 : vector<1x20x16xf32> to vector<20x16xf32>
    %67 = vector.shape_cast %64 : vector<20x16xf32> to vector<1x20x16xf32>
    tpu.vector_store %arg6[%c0_39, %c0_40, %c0_41], %67 {strides = array<i32>} : memref<1x20x16xf32, #tpu.memory_space<vmem>>, vector<1x20x16xf32>,
    return
  }
  func.func @transform_0(%arg0: i32) -> (i32, i32, i32) {
    %c0_i32 = arith.constant 0 : i32
    %c0_i32_0 = arith.constant 0 : i32
    %c0_i32_1 = arith.constant 0 : i32
    return %arg0, %c0_i32, %c0_i32_0 : i32, i32, i32
  }
  func.func @transform_1(%arg0: i32) -> (i32, i32) {
    %c0_i32 = arith.constant 0 : i32
    %c0_i32_0 = arith.constant 0 : i32
    %c0_i32_1 = arith.constant 0 : i32
    return %c0_i32, %c0_i32_0 : i32, i32
  }
  func.func @transform_2(%arg0: i32) -> (i32, i32) {
    %c0_i32 = arith.constant 0 : i32
    %c0_i32_0 = arith.constant 0 : i32
    %c0_i32_1 = arith.constant 0 : i32
    return %c0_i32, %c0_i32_0 : i32, i32
  }
  func.func @transform_3(%arg0: i32) -> (i32, i32) {
    %c0_i32 = arith.constant 0 : i32
    %c0_i32_0 = arith.constant 0 : i32
    %c0_i32_1 = arith.constant 0 : i32
    return %c0_i32, %c0_i32_0 : i32, i32
  }
  func.func @transform_4(%arg0: i32) -> (i32, i32, i32) {
    %c0_i32 = arith.constant 0 : i32
    %c0_i32_0 = arith.constant 0 : i32
    %c0_i32_1 = arith.constant 0 : i32
    return %arg0, %c0_i32, %c0_i32_0 : i32, i32, i32
  }
  func.func @transform_5(%arg0: i32) -> (i32, i32, i32) {
    %c0_i32 = arith.constant 0 : i32
    %c0_i32_0 = arith.constant 0 : i32
    %c0_i32_1 = arith.constant 0 : i32
    return %arg0, %c0_i32, %c0_i32_0 : i32, i32, i32
  }
}

</mosaic_0001>

<bundles_post_ra>
// kernel: stft_forward.1
= control target key start
LH: loop header
LB: loop body
LE: loop exit
PB: predicated region body
PF: predicated region fallthrough
CT: control target
= control target key end

     0   :  { %s1216_s18 = smov 0   ;;  %s1490_s0 = inlined_call_operand.vmem [shape: f32[2,20,16], index: 0, kind: input, shape index: {}]   ;;  %s1491_s1 = inlined_call_operand.vmem [shape: f32[64,128], index: 1, kind: input, shape index: {}]   ;;  %s1492_s2 = inlined_call_operand.vmem [shape: f32[128,64], index: 2, kind: input, shape index: {}]   ;;  %s1493_s3 = inlined_call_operand.vmem [shape: f32[20,16], index: 3, kind: input, shape index: {}]   ;;  %s1494_s4 = inlined_call_operand.vmem [shape: f32[2,17,128], index: 4, kind: output, shape index: {0}]   ;;  %s1495_s5 = inlined_call_operand.vmem [shape: f32[2,20,16], index: 5, kind: output, shape index: {1}]  }
   0x1 LB: > { %s991_s19 = sadd.s32 4294967295, %s1180_s18   ;;  %p995_p0 = scmp.ge.s32.totalorder %s1180_s18, 1  ;;  %s1180_s18 = sphi %s1216_s18, %s16_s18  }
   0x2   : > { %p190_p1 = scmp.lt.s32.totalorder %s1180_s18, 3 }
   0x4   : > { %p191_p2 = pnand %p995_p0, %p190_p1 }
   0x5   : > { %p223_p3 = scmp.lt.s32.totalorder (!%p191_p2), %s991_s19, 1  ;;  %s1182_s13 = smov (!%p191_p2), 112  }
   0x6   : > { %194 = sbr.rel (%p191_p2) target bundleno = 653 (0x28d), region = 36  ;;  %s1183_s28 = smov (!%p191_p2), 96  }
   0xb   : > { %v428_v0 = vld [vmem:[%s1492_s2 + $0x70] sm:$0xff]  ;;  %v429_v1 = vld [vmem:[%s1492_s2 + $0x78] sm:$0xff]  ;;  %v323_v2 = vld [vmem:[%s1491_s1 + $0x28] sm:$0xff]  ;;  %s1497_s19 = smov (!%p223_p3, %s991_s19), 1  ;;  %vm248_vm0 = vcmask 130048   ;;  %vm577_vm1 = vcmask 1040384  }
   0xc   : > { %v1233_v3 = vpack.i.bf16 %v428_v0, %v429_v1  ;;  %347 = vmatpush.msra.mxu2 %v323_v2  ;;  %v1238_v4 = vld [vmem:[%s1492_s2 + $0x50] sm:$0xff]  ;;  %v1243_v5 = vld [vmem:[%s1492_s2 + $0x58] sm:$0xff]  ;;  %v322_v6 = vld [vmem:[%s1491_s1 + $0x20] sm:$0xff]  ;;  %s1271_s20 = smul.u32 24, %s1497_s19  ;;  %vm567_vm3 = vcmask 138240   ;;  %vm901_vm15 = vcmask 125952  }
   0xd   : > { %v1250_v7 = vpack.i.bf16 %v1238_v4, %v1243_v5  ;;  %v366_v8 = vld [vmem:[%s1491_s1 + $0x38] sm:$0xff]  ;;  %v242_v10 = vld [vmem:[%s1491_s1 + $0x8] sm:$0xff]  ;;  %v365_v11 = vld [vmem:[%s1491_s1 + $0x30] sm:$0xff] }
   0xe   : > { %v247_v9 = vld [vmem:[%s1491_s1 + $0x18] sm:$0xff]  ;;  %1055 = vrot.lane.b32.xlu0 %v1233_v3, %s1182_s13  ;;  %348 = vmatpush.msra.mxu2 %v322_v6  ;;  %v426_v12 = vld [vmem:[%s1492_s2 + $0x60] sm:$0xff]  ;;  %v427_v13 = vld [vmem:[%s1492_s2 + $0x68] sm:$0xff]  ;;  %s1292_s7 = scalar_lea.vmem %s1490_s0, %s1271_s20  ;;  %s1374_s30 = scalar_lea.vmem %s1494_s4, %s1271_s20 }
   0xf   : > { %1065 = vrot.lane.b32.xlu1 %v1250_v7, %s1182_s13  ;;  %390 = vmatpush.msra.mxu3 %v366_v8  ;;  %v246_v14 = vld [vmem:[%s1491_s1 + $0x10] sm:$0xff]  ;;  %v241_v15 = vld [vmem:[%s1491_s1] sm:$0xff]  ;;  %v423_v17 = vld [vmem:[%s1492_s2 + $0x48] sm:$0xff]  ;;  %v1296_v20 = vpack.i.bf16 %v426_v12, %v427_v13  ;;  %s237_s10 = scalar_lea.vmem %s1495_s5, %s1271_s20 }
  0x10   : > { %272 = vmatpush.msra.mxu0 %v247_v9  ;;  %307 = vmatpush.msra.mxu1 %v242_v10  ;;  %v422_v16 = vld [vmem:[%s1492_s2 + $0x40] sm:$0xff]  ;;  %v420_v24 = vld [vmem:[%s1492_s2 + $0x30] sm:$0xff]  ;;  %v421_v25 = vld [vmem:[%s1492_s2 + $0x38] sm:$0xff] }
  0x11   : > { %391 = vmatpush.msra.mxu3 %v365_v11  ;;  %v319_v18 = vld [vmem:[%s1292_s7 + $0x2] sm:$0xff]  ;;  %v1302_v23 = vpack.i.bf16 %v422_v16, %v423_v17  ;;  %v416_v26 = vld [vmem:[%s1492_s2 + $0x10] sm:$0xff]  ;;  %v417_v27 = vld [vmem:[%s1492_s2 + $0x18] sm:$0xff]  ;;  %v1074_v29 = vpack.i.bf16 %v420_v24, %v421_v25 }
  0x12   : > { %v362_v19 = vld [vmem:[%s1292_s7 + $0x3] sm:$0xff]  ;;  %273 = vmatpush.msra.mxu0 %v246_v14  ;;  %308 = vmatpush.msra.mxu1 %v241_v15  ;;  %v363_v31 = vld [vmem:[%s1292_s7 + $0xb] sm:$0xff]  ;;  %v1084_v35 = vpack.i.bf16 %v416_v26, %v417_v27  ;;  %v364_v41 = vld [vmem:[%s1292_s7 + $0x13] sm:$0x1] }
  0x13   : > { %v243_v21 = vld [vmem:[%s1292_s7 + $0x1] sm:$0xff]  ;;  %1005 = vmatmul.msk.f32.vlgmr.msra.gmra.mxu2 %vm248_vm0, %v319_v18  ;;  %1008 = vmatmul.msk.f32.vlgmr.msra.gmra.mxu3 %vm248_vm0, %v362_v19  ;;  %v320_v30 = vld [vmem:[%s1292_s7 + $0xa] sm:$0xff]  ;;  %v321_v40 = vld [vmem:[%s1292_s7 + $0x12] sm:$0x1] }
  0x14   : > { %v238_v22 = vld [vmem:[%s1292_s7] sm:$0xff]  ;;  %999 = vmatmul.msk.f32.vlgmr.msra.gmra.mxu0 %vm248_vm0, %v243_v21  ;;  %v415_v32 = vld [vmem:[%s1492_s2 + $0x8] sm:$0xff]  ;;  %1075 = vrot.lane.b32.xlu2 %v1074_v29, %s1182_s13  ;;  %v245_v42 = vld [vmem:[%s1292_s7 + $0x11] sm:$0x1] }
  0x15   : > { %1002 = vmatmul.msk.f32.vlgmr.msra.gmra.mxu1 %vm248_vm0, %v238_v22  ;;  %430 = vmatpush.msrb.mxu0 %v429_v1  ;;  %v414_v28 = vld [vmem:[%s1492_s2] sm:$0xff]  ;;  %v244_v33 = vld [vmem:[%s1292_s7 + $0x9] sm:$0xff] }
  0x16   : > { %1060 = vrot.lane.b32.xlu0 %v1296_v20, %s1182_s13  ;;  %v239_v34 = vld [vmem:[%s1292_s7 + $0x8] sm:$0xff]  ;;  %v418_v36 = vld [vmem:[%s1492_s2 + $0x20] sm:$0xff]  ;;  %v1089_v38 = vpack.i.bf16 %v414_v28, %v415_v32  ;;  %v240_v43 = vld [vmem:[%s1292_s7 + $0x10] sm:$0x1] }
  0x17   : > { %1070 = vrot.lane.b32.xlu1 %v1302_v23, %s1182_s13  ;;  %431 = vmatpush.msrb.mxu0 %v428_v0  ;;  %v419_v37 = vld [vmem:[%s1492_s2 + $0x28] sm:$0xff] }
  0x18   : > { %v1079_v39 = vpack.i.bf16 %v418_v36, %v419_v37 }
  0x19   : > { %432 = vmatpush.msrb.mxu0 %v427_v13 }
  0x1b   : > { %1006 = vmatmul.msk.f32.gmra.mxu2 %vm248_vm0, %v320_v30  ;;  %1009 = vmatmul.msk.f32.gmra.mxu3 %vm248_vm0, %v363_v31 }
  0x1c   : > { %1000 = vmatmul.msk.f32.gmra.mxu0 %vm248_vm0, %v244_v33  ;;  %1080 = vrot.lane.b32.xlu2 %v1079_v39, %s1182_s13 }
  0x1d   : > { %1003 = vmatmul.msk.f32.gmra.mxu1 %vm248_vm0, %v239_v34  ;;  %433 = vmatpush.msrb.mxu0 %v426_v12 }
  0x1e   : > { %1085 = vrot.lane.b32.xlu0 %v1084_v35, %s1182_s13 }
  0x1f   : > { %1090 = vrot.lane.b32.xlu1 %v1089_v38, %s1182_s13  ;;  %434 = vmatpush.msrb.mxu0 %v1243_v5  ;;  %s1184_s13 = smov 80  }
  0x21   : > { %435 = vmatpush.msrb.mxu0 %v1238_v4 }
  0x23   : > { %1007 = vmatmul.msk.f32.gmra.mxu2 %vm248_vm0, %v321_v40  ;;  %1010 = vmatmul.msk.f32.gmra.mxu3 %vm248_vm0, %v364_v41 }
  0x24   : > { %1001 = vmatmul.msk.f32.gmra.mxu0 %vm248_vm0, %v245_v42  ;;  %1095 = vrot.lane.b32.xlu2 %v1233_v3, %s1183_s28 }
  0x25   : > { %1004 = vmatmul.msk.f32.gmra.mxu1 %vm248_vm0, %v240_v43  ;;  %436 = vmatpush.msrb.mxu0 %v423_v17 }
  0x26   : > { %1100 = vrot.lane.b32.xlu0 %v1296_v20, %s1183_s28 }
  0x27   : > { %1105 = vrot.lane.b32.xlu1 %v1250_v7, %s1183_s28  ;;  %437 = vmatpush.msrb.mxu0 %v422_v16 }
  0x29   : > { %438 = vmatpush.msrb.mxu0 %v421_v25 }
  0x2b   : > { %439 = vmatpush.msrb.mxu0 %v420_v24 }
  0x2c   : > { %1110 = vrot.lane.b32.xlu2 %v1302_v23, %s1183_s28 }
  0x2d   : > { %440 = vmatpush.msrb.mxu0 %v419_v37 }
  0x2e   : > { %1115 = vrot.lane.b32.xlu0 %v1233_v3, %s1184_s13 }
  0x2f   : > { %1120 = vrot.lane.b32.xlu1 %v1074_v29, %s1183_s28  ;;  %441 = vmatpush.msrb.mxu0 %v418_v36 }
  0x31   : > { %442 = vmatpush.msrb.mxu0 %v417_v27 }
  0x33   : > { %443 = vmatpush.msrb.mxu0 %v416_v26 }
  0x34   : > { %1125 = vrot.lane.b32.xlu2 %v1296_v20, %s1184_s13 }
  0x35   : > { %444 = vmatpush.msrb.mxu0 %v415_v32 }
  0x36   : > { %1130 = vrot.lane.b32.xlu0 %v1079_v39, %s1183_s28 }
  0x37   : > { %1135 = vrot.lane.b32.xlu1 %v1250_v7, %s1184_s13  ;;  %445 = vmatpush.msrb.mxu0 %v414_v28 }
  0x3c   : > { %1140 = vrot.lane.b32.xlu2 %v1084_v35, %s1183_s28 }
  0x3e   : > { %1145 = vrot.lane.b32.xlu0 %v1302_v23, %s1184_s13 }
  0x3f   : > { %1150 = vrot.lane.b32.xlu1 %v1089_v38, %s1183_s28 }
  0x44   : > { %1155 = vrot.lane.b32.xlu2 %v1074_v29, %s1184_s13 }
  0x46   : > { %1160 = vrot.lane.b32.xlu0 %v1079_v39, %s1184_s13 }
  0x47   : > { %1165 = vrot.lane.b32.xlu1 %v1084_v35, %s1184_s13 }
  0x4c   : > { %1170 = vrot.lane.b32.xlu2 %v1089_v38, %s1184_s13 }
  0x6e   : > { %v1076_v44 = vpop.permute.xlu2 %1075 }
  0x6f   : > { %v1077_v1 = vunpack.i.l.bf16 %v1076_v44  ;;  %v1078_v5 = vunpack.i.h.bf16 %v1076_v44 }
  0x76   : > { %v1081_v45 = vpop.permute.xlu2 %1080 }
  0x77   : > { %v1082_v6 = vunpack.i.l.bf16 %v1081_v45  ;;  %v1083_v13 = vunpack.i.h.bf16 %v1081_v45 }
  0x7e   : > { %v1364_v50 = vpop.permute.xlu2 %1095 }
  0x80   : > { %v1056_v46 = vpop.permute.xlu0 %1055 }
  0x81   : > { %v1057_v47 = vunpack.i.l.bf16 %v1056_v46  ;;  %v1066_v48 = vpop.permute.xlu1 %1065  ;;  %v1058_v49 = vunpack.i.h.bf16 %v1056_v46 }
  0x82   : > { %v1067_v55 = vunpack.i.l.bf16 %v1066_v48  ;;  %v1068_v56 = vunpack.i.h.bf16 %v1066_v48 }
  0x83   : > { %532 = vmatpush.msrb.mxu1 %v1057_v47 }
  0x85   : > { %533 = vmatpush.msrb.mxu1 %v1058_v49 }
  0x86   : > { %v1366_v59 = vpop.permute.xlu2 %1110 }
  0x88   : > { %v1061_v51 = vpop.permute.xlu0 %1060 }
  0x89   : > { %v1062_v52 = vunpack.i.l.bf16 %v1061_v51  ;;  %v1071_v53 = vpop.permute.xlu1 %1070  ;;  %v1063_v54 = vunpack.i.h.bf16 %v1061_v51 }
  0x8a   : > { %v1072_v57 = vunpack.i.l.bf16 %v1071_v53  ;;  %v1073_v0 = vunpack.i.h.bf16 %v1071_v53 }
  0x8b   : > { %534 = vmatpush.msrb.mxu1 %v1062_v52 }
  0x8d   : > { %535 = vmatpush.msrb.mxu1 %v1063_v54 }
  0x8e   : > { %v1126_v15 = vpop.permute.xlu2 %1125 }
  0x8f   : > { %536 = vmatpush.msrb.mxu1 %v1067_v55  ;;  %v1127_v30 = vunpack.i.l.bf16 %v1126_v15  ;;  %v1128_v32 = vunpack.i.h.bf16 %v1126_v15  ;;  %v1097_v15 = vunpack.i.l.bf16 %v1364_v50 }
  0x90   : > { %v1086_v58 = vpop.permute.xlu0 %1085 }
  0x91   : > { %537 = vmatpush.msrb.mxu1 %v1068_v56  ;;  %v1091_v60 = vpop.permute.xlu1 %1090  ;;  %v275_v61 = vpop.f32.mrf.mxu0  ;;  %v1087_v14 = vunpack.i.l.bf16 %v1086_v58  ;;  %v1088_v19 = vunpack.i.h.bf16 %v1086_v58 }
  0x92   : > { %v310_v62 = vpop.f32.mrf.mxu1  ;;  %v1092_v20 = vunpack.i.l.bf16 %v1091_v60  ;;  %v1093_v29 = vunpack.i.h.bf16 %v1091_v60  ;;  %v408_v60 = vlaneseq }
  0x93   : > { %538 = vmatpush.msrb.mxu1 %v1072_v57  ;;  %v311_v63 = vadd.f32 %v310_v62, %v275_v61 }
  0x94   : > { %v409_v62 = vshrl.u32 %v408_v60, 7 }
  0x95   : > { %539 = vmatpush.msrb.mxu1 %v1073_v0 }
  0x96   : > { %v350_v2 = vpop.f32.mrf.mxu2  ;;  %v393_v3 = vpop.f32.mrf.mxu3 }
  0x97   : > { %v359_v4 = vadd.f32 %v350_v2, %v311_v63  ;;  %540 = vmatpush.msrb.mxu1 %v1077_v1  ;;  %v1390_v31 = vpop.permute.xlu2 %1140  ;;  %v413_v63 = vand.u32 127, %v408_v60 }
  0x98   : > { %v1368_v7 = vpop.permute.xlu0 %1100 }
  0x99   : > { %v1376_v8 = vadd.f32 %v393_v3, %v359_v4  ;;  %541 = vmatpush.msrb.mxu1 %v1078_v5  ;;  %v1378_v9 = vpop.permute.xlu1 %1105  ;;  %v278_v10 = vpop.f32.mrf.mxu0  ;;  %v1407_v1 = vsub.s32 %v409_v62, %v413_v63  ;;  %v410_v3 = vadd.s32 8, %v409_v62  ;;  %v1185_v5 = vmov 0.0  }
  0x9a   : > { %v313_v11 = vpop.f32.mrf.mxu1 }
  0x9b   : > { %405 = vst [vmem:[%s1374_s30] sm:$0xff] %v1376_v8  ;;  %446 = vmatmul.f32.vlgmr.msrb.gmra.mxu0 %v1376_v8  ;;  %542 = vmatpush.msrb.mxu1 %v1082_v6  ;;  %v314_v12 = vadd.f32 %v313_v11, %v278_v10  ;;  %vm459_vm2 = vcmp.eq.s32.totalorder %v1407_v1, 0  ;;  %v1412_v10 = vsub.s32 %v410_v3, %v413_v63  ;;  %v411_v11 = vadd.s32 16, %v409_v62 }
  0x9c   : > { %v1011_v6 = vsel %vm459_vm2, 1.0, %v1185_v5  ;;  %vm558_vm5 = vcmp.eq.s32.totalorder %v1407_v1, 1  ;;  %vm843_vm9 = vcmp.eq.s32.totalorder %v1407_v1, 3  ;;  %vm719_vm12 = vcmp.eq.s32.totalorder %v1407_v1, 2 }
  0x9d   : > { %543 = vmatpush.msrb.mxu1 %v1083_v13  ;;  %vm460_vm4 = vcmp.eq.s32.totalorder %v1412_v10, 0  ;;  %vm559_vm7 = vcmp.eq.s32.totalorder %v1412_v10, 1  ;;  %vm844_vm10 = vcmp.eq.s32.totalorder %v1412_v10, 3  ;;  %vm720_vm13 = vcmp.eq.s32.totalorder %v1412_v10, 2 }
  0x9e   : > { %v353_v16 = vpop.f32.mrf.mxu2  ;;  %v396_v17 = vpop.f32.mrf.mxu3  ;;  %v1012_v13 = vsel %vm460_vm4, 1.0, %v1185_v5 }
  0x9f   : > { %v360_v18 = vadd.f32 %v353_v16, %v314_v12  ;;  %544 = vmatpush.msrb.mxu1 %v1087_v14  ;;  %v1156_v42 = vpop.permute.xlu2 %1155  ;;  %v1419_v14 = vsub.s32 %v411_v11, %v413_v63  ;;  %v1014_v16 = vsel %vm558_vm5, 1.0, %v1185_v5 }
  0xa0   : > { %v1116_v21 = vpop.permute.xlu0 %1115  ;;  %v1157_v46 = vunpack.i.l.bf16 %v1156_v42  ;;  %v1158_v47 = vunpack.i.h.bf16 %v1156_v42  ;;  %v1025_v42 = vsel %vm719_vm12, 1.0, %v1185_v5 }
  0xa1   : > { %v1117_v22 = vunpack.i.l.bf16 %v1116_v21  ;;  %v1383_v23 = vadd.f32 %v396_v17, %v360_v18  ;;  %545 = vmatpush.msrb.mxu1 %v1088_v19  ;;  %v1385_v24 = vpop.permute.xlu1 %1120  ;;  %v281_v25 = vpop.f32.mrf.mxu0  ;;  %v1118_v26 = vunpack.i.h.bf16 %v1116_v21  ;;  %vm461_vm6 = vcmp.eq.s32.totalorder %v1419_v14, 0 }
  0xa2   : > { %v316_v27 = vpop.f32.mrf.mxu1  ;;  %v1098_v17 = vunpack.i.h.bf16 %v1364_v50  ;;  %v1102_v18 = vunpack.i.l.bf16 %v1368_v7  ;;  %v1013_v19 = vsel %vm461_vm6, 1.0, %v1185_v5  ;;  %v1107_v21 = vunpack.i.l.bf16 %v1378_v9 }
  0xa3   : > { %406 = vst [vmem:[%s1374_s30 + $0x8] sm:$0xff] %v1383_v23  ;;  %449 = vmatmul.f32.gmra.mxu0 %v1383_v23  ;;  %546 = vmatpush.msrb.mxu1 %v1092_v20  ;;  %v317_v28 = vadd.f32 %v316_v27, %v281_v25  ;;  %v1103_v20 = vunpack.i.h.bf16 %v1368_v7  ;;  %v1015_v50 = vsel %vm559_vm7, 1.0, %v1185_v5  ;;  %v1112_v25 = vunpack.i.l.bf16 %v1366_v59 }
  0xa4   : > { %817 = vmatpush.msra.mxu0 %v1117_v22  ;;  %v1108_v22 = vunpack.i.h.bf16 %v1378_v9  ;;  %vm560_vm8 = vcmp.eq.s32.totalorder %v1419_v14, 1  ;;  %v1113_v7 = vunpack.i.h.bf16 %v1366_v59  ;;  %v1122_v27 = vunpack.i.l.bf16 %v1385_v24 }
  0xa5   : > { %547 = vmatpush.msrb.mxu1 %v1093_v29  ;;  %v1123_v29 = vunpack.i.h.bf16 %v1385_v24  ;;  %v1142_v59 = vunpack.i.l.bf16 %v1390_v31  ;;  %vm845_vm11 = vcmp.eq.s32.totalorder %v1419_v14, 3  ;;  %vm721_vm14 = vcmp.eq.s32.totalorder %v1419_v14, 2 }
  0xa6   : > { %v356_v33 = vpop.f32.mrf.mxu2  ;;  %548 = vmatmul.f32.vlgmr.msrb.gmra.mxu1 %v1376_v8  ;;  %v399_v34 = vpop.f32.mrf.mxu3  ;;  %818 = vmatpush.msra.mxu0 %v1118_v26 }
  0xa7   : > { %v361_v35 = vadd.f32 %v356_v33, %v317_v28  ;;  %v1171_v54 = vpop.permute.xlu2 %1170  ;;  %v1016_v28 = vsel %vm560_vm8, 1.0, %v1185_v5  ;;  %v1143_v33 = vunpack.i.h.bf16 %v1390_v31 }
  0xa8   : > { %v1393_v36 = vpop.permute.xlu0 %1130  ;;  %819 = vmatpush.msra.mxu0 %v1127_v30  ;;  %v1172_v56 = vunpack.i.l.bf16 %v1171_v54  ;;  %v1173_v57 = vunpack.i.h.bf16 %v1171_v54 }
  0xa9   : > { %v1395_v37 = vadd.f32 %v399_v34, %v361_v35  ;;  %v1136_v38 = vpop.permute.xlu1 %1135  ;;  %v1132_v9 = vunpack.i.l.bf16 %v1393_v36 }
  0xaa   : > { %v1138_v39 = vunpack.i.h.bf16 %v1136_v38  ;;  %v1137_v40 = vunpack.i.l.bf16 %v1136_v38  ;;  %820 = vmatpush.msra.mxu0 %v1128_v32  ;;  %v1133_v32 = vunpack.i.h.bf16 %v1393_v36 }
  0xab   : > { %407 = vst [vmem:[%s1374_s30 + $0x10] sm:$0x1] %v1395_v37  ;;  %452 = vmatmul.f32.gmra.mxu0 %v1395_v37 }
  0xac   : > { %821 = vmatpush.msra.mxu0 %v1137_v40 }
  0xae   : > { %551 = vmatmul.f32.gmra.mxu1 %v1383_v23  ;;  %822 = vmatpush.msra.mxu0 %v1138_v39  ;;  %v1032_v39 = vsel %vm843_vm9, 1.0, %v1185_v5 }
  0xb0   : > { %v1146_v41 = vpop.permute.xlu0 %1145 }
  0xb1   : > { %v1148_v43 = vunpack.i.h.bf16 %v1146_v41  ;;  %v1147_v44 = vunpack.i.l.bf16 %v1146_v41  ;;  %v1401_v45 = vpop.permute.xlu1 %1150  ;;  %v1033_v41 = vsel %vm844_vm10, 1.0, %v1185_v5 }
  0xb2   : > { %v1152_v34 = vunpack.i.l.bf16 %v1401_v45  ;;  %v1153_v35 = vunpack.i.h.bf16 %v1401_v45 }
  0xb3   : > { %823 = vmatpush.msra.mxu0 %v1147_v44  ;;  %v1027_v44 = vsel %vm721_vm14, 1.0, %v1185_v5 }
  0xb5   : > { %824 = vmatpush.msra.mxu0 %v1148_v43  ;;  %v1026_v43 = vsel %vm720_vm13, 1.0, %v1185_v5 }
  0xb6   : > { %554 = vmatmul.f32.gmra.mxu1 %v1395_v37 }
  0xb7   : > { %825 = vmatpush.msra.mxu0 %v1157_v46 }
  0xb8   : > { %v1161_v48 = vpop.permute.xlu0 %1160 }
  0xb9   : > { %v1163_v49 = vunpack.i.h.bf16 %v1161_v48  ;;  %v1162_v51 = vunpack.i.l.bf16 %v1161_v48  ;;  %826 = vmatpush.msra.mxu0 %v1158_v47  ;;  %v1166_v52 = vpop.permute.xlu1 %1165 }
  0xba   : > { %v1167_v53 = vunpack.i.l.bf16 %v1166_v52  ;;  %v1168_v55 = vunpack.i.h.bf16 %v1166_v52 }
  0xbb   : > { %827 = vmatpush.msra.mxu0 %v1162_v51 }
  0xbd   : > { %828 = vmatpush.msra.mxu0 %v1163_v49 }
  0xbf   : > { %829 = vmatpush.msra.mxu0 %v1167_v53  ;;  %v893_v53 = vld [vmem:[%s1493_s3] sm:$0xff] }
  0xc1   : > { %830 = vmatpush.msra.mxu0 %v1168_v55 }
  0xc3   : > { %831 = vmatpush.msra.mxu0 %v1172_v56 }
  0xc5   : > { %832 = vmatpush.msra.mxu0 %v1173_v57 }
  0xc6   : > { %833 = vmatmul.f32.vlgmr.msra.gmra.mxu0 %v1376_v8 }
  0xce   : > { %836 = vmatmul.f32.gmra.mxu0 %v1383_v23 }
  0xd6   : > { %839 = vmatmul.f32.gmra.mxu0 %v1395_v37 }
 0x118   : > { %v447_v58 = vpop.f32.mrf.mxu0 }
 0x120   : > { %v450_v61 = vpop.f32.mrf.mxu0 }
 0x123   : > { %v549_v0 = vpop.f32.mrf.mxu1 }
 0x128   : > { %v453_v2 = vpop.f32.mrf.mxu0 }
 0x129   : > { %1021 = vmatpush.msk.msrb.mxu3 %vm577_vm1, %v453_v2 }
 0x12b   : > { %v552_v4 = vpop.f32.mrf.mxu1  ;;  %633 = vmatpush.msrb.mxu3 %v450_v61  ;;  %v894_v61 = vld [vmem:[%s1493_s3 + $0x8] sm:$0xff] }
 0x12d   : > { %634 = vmatpush.msrb.mxu3 %v447_v58 }
 0x12e   : > { %1022 = vmatmul.msk.f32.vlgmr.msrb.gmra.mxu3 %vm567_vm3, %v1011_v6 }
 0x133   : > { %v555_v12 = vpop.f32.mrf.mxu1 }
 0x134   : > { %1017 = vmatpush.msk.msrb.mxu2 %vm577_vm1, %v555_v12 }
 0x136   : > { %595 = vmatpush.msrb.mxu2 %v552_v4  ;;  %1023 = vmatmul.msk.f32.gmra.mxu3 %vm567_vm3, %v1012_v13  ;;  %v895_v4 = vld [vmem:[%s1493_s3 + $0x10] sm:$0xf] }
 0x138   : > { %596 = vmatpush.msrb.mxu2 %v549_v0 }
 0x139   : > { %1018 = vmatmul.msk.f32.vlgmr.msrb.gmra.mxu2 %vm567_vm3, %v1014_v16 }
 0x13a   : > { %693 = vmatpush.msra.mxu2 %v1097_v15 }
 0x13c   : > { %694 = vmatpush.msra.mxu2 %v1098_v17 }
 0x13e   : > { %695 = vmatpush.msra.mxu2 %v1102_v18  ;;  %1024 = vmatmul.msk.f32.gmra.mxu3 %vm567_vm3, %v1013_v19 }
 0x140   : > { %696 = vmatpush.msra.mxu2 %v1103_v20 }
 0x141   : > { %1019 = vmatmul.msk.f32.gmra.mxu2 %vm567_vm3, %v1015_v50 }
 0x142   : > { %697 = vmatpush.msra.mxu2 %v1107_v21 }
 0x143   : > { %v834_v26 = vpop.f32.mrf.mxu0 }
 0x144   : > { %698 = vmatpush.msra.mxu2 %v1108_v22 }
 0x146   : > { %699 = vmatpush.msra.mxu2 %v1112_v25 }
 0x148   : > { %700 = vmatpush.msra.mxu2 %v1113_v7 }
 0x149   : > { %1020 = vmatmul.msk.f32.gmra.mxu2 %vm567_vm3, %v1016_v28 }
 0x14a   : > { %701 = vmatpush.msra.mxu2 %v1122_v27 }
 0x14b   : > { %v837_v30 = vpop.f32.mrf.mxu0 }
 0x14c   : > { %702 = vmatpush.msra.mxu2 %v1123_v29 }
 0x14e   : > { %703 = vmatpush.msra.mxu2 %v1132_v9 }
 0x150   : > { %704 = vmatpush.msra.mxu2 %v1133_v32 }
 0x152   : > { %705 = vmatpush.msra.mxu2 %v1142_v59 }
 0x153   : > { %v840_v24 = vpop.f32.mrf.mxu0 }
 0x154   : > { %706 = vmatpush.msra.mxu2 %v1143_v33  ;;  %1035 = vmatpush.msk.msra.mxu1 %vm577_vm1, %v840_v24 }
 0x156   : > { %707 = vmatpush.msra.mxu2 %v1152_v34  ;;  %878 = vmatpush.msra.mxu1 %v837_v30 }
 0x158   : > { %708 = vmatpush.msra.mxu2 %v1153_v35  ;;  %879 = vmatpush.msra.mxu1 %v834_v26 }
 0x159   : > { %709 = vmatmul.f32.vlgmr.msra.gmra.mxu2 %v1376_v8  ;;  %1036 = vmatmul.msk.f32.vlgmr.msra.gmra.mxu1 %vm567_vm3, %v1032_v39 }
 0x161   : > { %712 = vmatmul.f32.gmra.mxu2 %v1383_v23  ;;  %1037 = vmatmul.msk.f32.gmra.mxu1 %vm567_vm3, %v1033_v41  ;;  %v1034_v23 = vsel %vm845_vm11, 1.0, %v1185_v5 }
 0x169   : > { %715 = vmatmul.f32.gmra.mxu2 %v1395_v37  ;;  %1038 = vmatmul.msk.f32.gmra.mxu1 %vm567_vm3, %v1034_v23 }
 0x1b1   : > { %v636_v45 = vpop.f32.mrf.mxu3 }
 0x1b9   : > { %v639_v46 = vpop.f32.mrf.mxu3 }
 0x1bc   : > { %v598_v31 = vpop.f32.mrf.mxu2 }
 0x1bd   : > { %v637_v49 = vadd.f32 %v636_v45, %v598_v31 }
 0x1c1   : > { %v642_v47 = vpop.f32.mrf.mxu3 }
 0x1c4   : > { %v601_v36 = vpop.f32.mrf.mxu2 }
 0x1c5   : > { %v640_v57 = vadd.f32 %v639_v46, %v601_v36 }
 0x1cc   : > { %v604_v38 = vpop.f32.mrf.mxu2 }
 0x1cd   : > { %v643_v0 = vadd.f32 %v642_v47, %v604_v38 }
 0x1d6   : > { %v881_v48 = vpop.f32.mrf.mxu1 }
 0x1dc   : > { %v710_v40 = vpop.f32.mrf.mxu2 }
 0x1de   : > { %v884_v56 = vpop.f32.mrf.mxu1 }
 0x1e4   : > { %v713_v8 = vpop.f32.mrf.mxu2 }
 0x1e6   : > { %v887_v2 = vpop.f32.mrf.mxu1 }
 0x1ec   : > { %v716_v37 = vpop.f32.mrf.mxu2 }
 0x1ed   : > { %1028 = vmatpush.msk.msra.mxu3 %vm577_vm1, %v716_v37 }
 0x1ef   : > { %754 = vmatpush.msra.mxu3 %v713_v8 }
 0x1f1   : > { %755 = vmatpush.msra.mxu3 %v710_v40 }
 0x1f2   : > { %1029 = vmatmul.msk.f32.vlgmr.msra.gmra.mxu3 %vm567_vm3, %v1025_v42 }
 0x1fa   : > { %1030 = vmatmul.msk.f32.gmra.mxu3 %vm567_vm3, %v1026_v43 }
 0x202   : > { %1031 = vmatmul.msk.f32.gmra.mxu3 %vm567_vm3, %v1027_v44 }
 0x275   : > { %v757_v51 = vpop.f32.mrf.mxu3 }
 0x276   : > { %v766_v52 = vadd.f32 %v757_v51, %v637_v49 }
 0x278   : > { %v890_v54 = vadd.f32 %v881_v48, %v766_v52 }
 0x27a   : > { %v896_v55 = vmul.f32 %v893_v53, %v890_v54 }
 0x27c   : > { %899 = vst.msk [vmem:[%s237_s10] sm:$0xff] %vm248_vm0, %v896_v55 }
 0x27d   : > { %v760_v58 = vpop.f32.mrf.mxu3 }
 0x27e   : > { %v767_v60 = vadd.f32 %v760_v58, %v640_v57 }
 0x280   : > { %v891_v62 = vadd.f32 %v884_v56, %v767_v60 }
 0x282   : > { %v897_v63 = vmul.f32 %v894_v61, %v891_v62 }
 0x284   : > { %900 = vst.msk [vmem:[%s237_s10 + $0x8] sm:$0xff] %vm248_vm0, %v897_v63 }
 0x285   : > { %v763_v1 = vpop.f32.mrf.mxu3 }
 0x286   : > { %v768_v3 = vadd.f32 %v763_v1, %v643_v0 }
 0x288   : > { %v892_v5 = vadd.f32 %v887_v2, %v768_v3 }
 0x28a   : > { %v898_v6 = vmul.f32 %v895_v4, %v892_v5 }
 0x28c   : > { %902 = vst.msk [vmem:[%s237_s10 + $0x10] sm:$0xf] %vm901_vm15, %v898_v6 }
 0x28d PF: > { %s16_s18 = sadd.s32 1, %s1180_s18  }
 0x28e   : > { %p13_p4 = scmp.ge.s32.totalorder %s16_s18, 4  }
 0x290   :  { %15 = sbr.rel (!%p13_p4) target bundleno = 1 (0x1), region = 78 }

</bundles_post_ra>
